<compile_context>
chip_gen: v6e
topology: v6e:2x2x1
jax: 0.10.0
libtpu: 0.0.40
codegen_flags: <defaults>
</compile_context>

<pallas_src>
import jax
import jax.numpy as jnp
from jax.experimental import pallas as pl
from jax.experimental.pallas import tpu as pltpu


def _dma_copy_kernel(x_ref, o_ref, sem):
    # Direct HBM->HBM DMA of the whole array. No VMEM staging, no vld/vst.
    cp = pltpu.make_async_copy(x_ref, o_ref, sem)
    cp.start()
    cp.wait()


def identity_copy(x):
    """Materialized identity (memcpy) via a single HBM->HBM DMA."""
    return pl.pallas_call(
        _dma_copy_kernel,
        out_shape=jax.ShapeDtypeStruct(x.shape, x.dtype),
        in_specs=[pl.BlockSpec(memory_space=pl.ANY)],
        out_specs=pl.BlockSpec(memory_space=pl.ANY),
        scratch_shapes=[pltpu.SemaphoreType.DMA(())],
    )(x)


def identity_map(x):
    """Pallas-module equivalent of IdentityMap.forward.

    Identity needs no data movement: returning x is free and strictly faster
    than any kernel (which would pay 2x HBM traffic for zero compute).
    """
    return x


class IdentityMapPallas:
    """Mirror of the PyTorch IdentityMap module (no parameters)."""

    def __call__(self, x, *args, **kwargs):
        return identity_map(x)

    @property
    def config(self):
        return {"mm_resampler_type": None}


if __name__ == "__main__":
    key = jax.random.PRNGKey(0)
    # Small multimodal-feature-like input: batch=2, seq=8, hidden=32.
    x = jax.random.normal(key, (2, 8, 32), dtype=jnp.float32)

    resampler = IdentityMapPallas()

    # Fast path: true identity, no copy.
    y = resampler(x)
    y = jax.block_until_ready(y)
    assert y.shape == x.shape and y.dtype == x.dtype
    assert bool(jnp.array_equal(y, x))

    # Materialized-copy path: direct HBM->HBM DMA Pallas kernel.
    y_copy = jax.block_until_ready(identity_copy(x))
    assert y_copy.shape == x.shape and y_copy.dtype == x.dtype
    assert bool(jnp.array_equal(y_copy, x))

    # Ragged shape / different dtype: the DMA path needs no reshape or tiling.
    key2 = jax.random.PRNGKey(0)
    x2 = jax.random.normal(key2, (3, 7, 5), dtype=jnp.bfloat16)
    y2 = jax.block_until_ready(identity_copy(x2))
    assert y2.shape == x2.shape and y2.dtype == x2.dtype
    assert bool(jnp.array_equal(y2, x2))

    assert resampler.config == {"mm_resampler_type": None}
    print("KERNEL_OK")
</pallas_src>

<mosaic_0001>
module attributes {stable_mosaic.version = 11 : i64} {
  func.func @_dma_copy_kernel(%arg0: memref<2x8x32xf32, #tpu.memory_space<any>>, %arg1: memref<2x8x32xf32, #tpu.memory_space<any>>, %arg2: memref<!tpu.dma_semaphore, #tpu.memory_space<semaphore_mem>>) attributes {dimension_semantics = [], scalar_prefetch = 0 : i64, scratch_operands = 1 : i64, tpu.core_type = #tpu.core_type<tc>} {
    tpu.enqueue_dma source(%arg0 : memref<2x8x32xf32, #tpu.memory_space<any>>) target(%arg1 : memref<2x8x32xf32, #tpu.memory_space<any>>) target_semaphore(%arg2 : memref<!tpu.dma_semaphore, #tpu.memory_space<semaphore_mem>>)
    tpu.wait_dma2 semaphore(%arg2 : memref<!tpu.dma_semaphore, #tpu.memory_space<semaphore_mem>>) src(%arg0 : memref<2x8x32xf32, #tpu.memory_space<any>>) dst(%arg1 : memref<2x8x32xf32, #tpu.memory_space<any>>)
    return
  }
}

</mosaic_0001>

<bundles_post_ra>
// kernel: tpu_custom_call.1
= control target key start
LH: loop header
LB: loop body
LE: loop exit
PB: predicated region body
PF: predicated region fallthrough
CT: control target
= control target key end

     0   :  { %s29_s6 = smov [#allocation2]   ;;  %s30_s7 = smov 131072   ;;  %s48_s0 = inlined_call_operand.hbm [shape: f32[2,8,32], index: 0, kind: input, shape index: {}]   ;;  %s49_s1 = inlined_call_operand.hbm [shape: f32[2,8,32], index: 1, kind: output, shape index: {}]  }
   0x1   :  { %s31_s8 = smov 0  }
   0x2   :  { %12 = dma.general %s48_s0, 256, %s49_s1, %s29_s6, %s30_s7, [#allocation4], %s31_s8, 0  }
   0x3   :  { %27 = dma.done.wait [#allocation2], 256 }
   0x4   :  { %28 = vsyncadd [#allocation2], 4294967040 }
   0x5   :  { %17 = vsyncmov [#allocation2] }
   0x8   :  { %s18_s13 = vpop.sfrf %17 }
   0x9   :  { %p23_p0 = scmp.ne.s32.totalorder %s18_s13, 0 }
   0xb   :  { %22 = shalt.err (%p23_p0)  }

</bundles_post_ra>
